<compile_context>
chip_gen: v7x
topology: tpu7x:2x2x1
jax: 0.10.0
libtpu: 0.0.40
codegen_flags: <defaults>
</compile_context>

<pallas_src>
import functools
import math

import jax
import jax.numpy as jnp
from jax.experimental import pallas as pl
from jax.experimental.pallas import tpu as pltpu


def attention_kernel(h_ref, enc_ref, wh_ref, we_ref, b_ref, v_ref, out_ref):
    # h_ref  : [TB, H]       hidden block (batch-major)
    # enc_ref: [S, TB*2H]    encoder block, ORIGINAL seq-first layout, features
    #                        flattened: lanes [b*2H:(b+1)*2H] == enc[:, b, :]
    # wh_ref : [H, H]        attn-weight rows acting on the hidden half
    # we_ref : [2H, H]       attn-weight rows acting on the encoder half
    # b_ref  : [1, H]        attn bias
    # v_ref  : [1, H]        scoring vector
    # out_ref: [TB, S]       softmax attention weights (batch-major)
    TB, H = h_ref.shape
    H2 = 2 * H

    # Hidden contribution + bias for the whole block, computed once (bias
    # folded here instead of being re-added on every (s, b) row).
    e_h = jnp.dot(h_ref[...], wh_ref[...],
                  preferred_element_type=jnp.float32) + b_ref[...]      # [TB, H]
    we = we_ref[...]                                                    # [2H, H]
    v = v_ref[...]                                                      # [1, H]

    # Static (fully unrolled) loop over the batch elements of this block: no
    # per-step grid overhead, weights stay resident in vregs, every iteration
    # is plain 2-D work over contiguous lane windows.
    score_rows = []
    for b in range(TB):
        enc_b = enc_ref[:, b * H2:(b + 1) * H2]                         # [S, 2H]
        e_e = jnp.dot(enc_b, we, preferred_element_type=jnp.float32)    # [S, H]
        energy = jnp.tanh(e_e + e_h[b:b + 1, :])                        # [S, H]

        # scores[s] = v . energy[s, :]  -> one MXU pass giving a [1, S] lane row
        score_rows.append(jax.lax.dot_general(
            v, energy,
            dimension_numbers=(((1,), (1,)), ((), ())),
            preferred_element_type=jnp.float32))                        # [1, S]

    # Assemble the dense [TB, S] score block (cheap sublane concat), then one
    # vectorized softmax over the sequence (lane) axis and a single dense store.
    scores = jnp.concatenate(score_rows, axis=0)                        # [TB, S]
    m = jnp.max(scores, axis=-1, keepdims=True)
    ex = jnp.exp(scores - m)
    out_ref[...] = (ex / jnp.sum(ex, axis=-1, keepdims=True)).astype(out_ref.dtype)


@functools.partial(jax.jit, static_argnames=("batch_block",))
def attention_forward(hidden, encoder_outputs, w, b, v, *, batch_block=None):
    """hidden: [B, H], encoder_outputs: [S, B, 2H], w: [3H, H], b: [H], v: [H].

    Returns softmax attention weights of shape [B, 1, S] (same as the PyTorch
    module's forward).
    """
    B, H = hidden.shape
    S = encoder_outputs.shape[0]

    tb = B if batch_block is None else batch_block
    if tb != B:
        # (8, 128) BlockSpec rules when the batch is tiled across grid steps.
        assert B % tb == 0 and tb % 8 == 0 and (tb * 2 * H) % 128 == 0, (
            "batch_block must divide B, be a multiple of 8, and keep the "
            "encoder lane block a multiple of 128")

    # Layout plumbing only (NO data movement): contiguous reshape + row slices.
    enc2 = encoder_outputs.reshape(S, B * 2 * H)        # [S, B*2H]  (free)
    w_h = w[:H, :]                                      # [H, H]
    w_e = w[H:, :]                                      # [2H, H]
    b2 = b[None, :]                                     # [1, H]
    v2 = v[None, :]                                     # [1, H]

    scores = pl.pallas_call(
        attention_kernel,
        out_shape=jax.ShapeDtypeStruct((B, S), jnp.float32),
        grid_spec=pltpu.PrefetchScalarGridSpec(
            num_scalar_prefetch=0,
            grid=(B // tb,),
            in_specs=[
                pl.BlockSpec((tb, H), lambda i: (i, 0)),            # hidden
                pl.BlockSpec((S, tb * 2 * H), lambda i: (0, i)),    # encoder
                pl.BlockSpec((H, H), lambda i: (0, 0)),             # W (hidden)
                pl.BlockSpec((2 * H, H), lambda i: (0, 0)),         # W (encoder)
                pl.BlockSpec((1, H), lambda i: (0, 0)),             # bias
                pl.BlockSpec((1, H), lambda i: (0, 0)),             # v
            ],
            out_specs=pl.BlockSpec((tb, S), lambda i: (i, 0)),
        ),
        compiler_params=pltpu.CompilerParams(
            dimension_semantics=("parallel",),
        ),
    )(hidden, enc2, w_h, w_e, b2, v2)

    return scores[:, None, :]                           # [B, 1, S]


def attention_reference(hidden, encoder_outputs, w, b, v):
    """Pure-JAX reference mirroring the PyTorch forward pass exactly."""
    B, H = hidden.shape
    S = encoder_outputs.shape[0]
    h = jnp.broadcast_to(hidden[:, None, :], (B, S, H))      # repeat + transpose
    enc = jnp.transpose(encoder_outputs, (1, 0, 2))           # [B, S, 2H]
    combined = jnp.concatenate([h, enc], axis=2)              # [B, S, 3H]
    energy = jnp.tanh(combined @ w + b)                       # [B, S, H]
    scores = jnp.einsum("bsh,h->bs", energy, v)               # bmm(v, energy^T)
    return jax.nn.softmax(scores, axis=1)[:, None, :]         # [B, 1, S]


if __name__ == "__main__":
    B, S, H = 2, 8, 32

    key = jax.random.PRNGKey(0)
    k_w, k_v, k_hid, k_enc = jax.random.split(key, 4)

    # Deterministic parameter init matching the module's weight_init:
    #   nn.Linear.weight ~ N(0, 0.01), bias = 0 ; v ~ U(-1/sqrt(H), 1/sqrt(H)).
    # (stored transposed: [3H, H] so the kernel computes x @ W directly)
    w = (0.01 * jax.random.normal(k_w, (3 * H, H))).astype(jnp.float32)
    b = jnp.zeros((H,), dtype=jnp.float32)
    stdv = 1.0 / math.sqrt(H)
    v = jax.random.uniform(k_v, (H,), minval=-stdv, maxval=stdv).astype(jnp.float32)

    hidden = jax.random.normal(k_hid, (B, H), dtype=jnp.float32)
    encoder_outputs = jax.random.normal(k_enc, (S, B, 2 * H), dtype=jnp.float32)

    out = attention_forward(hidden, encoder_outputs, w, b, v)
    out = jax.block_until_ready(out)

    ref = attention_reference(hidden, encoder_outputs, w, b, v)
    assert out.shape == (B, 1, S), out.shape
    assert jnp.allclose(out, ref, atol=1e-5, rtol=1e-5), "mismatch vs reference"
    # attention weights sum to 1 along the sequence axis
    assert jnp.allclose(jnp.sum(out, axis=-1), 1.0, atol=1e-5)

    print("KERNEL_OK")
</pallas_src>

<mosaic_0001>
module attributes {stable_mosaic.version = 11 : i64} {
  func.func @attention_kernel(%arg0: i32, %arg1: memref<2x32xf32, #tpu.memory_space<vmem>>, %arg2: memref<8x128xf32, #tpu.memory_space<vmem>>, %arg3: memref<32x32xf32, #tpu.memory_space<vmem>>, %arg4: memref<64x32xf32, #tpu.memory_space<vmem>>, %arg5: memref<1x32xf32, #tpu.memory_space<vmem>>, %arg6: memref<1x32xf32, #tpu.memory_space<vmem>>, %arg7: memref<2x8xf32, #tpu.memory_space<vmem>>) attributes {dimension_semantics = [#tpu.dimension_semantics<parallel>], iteration_bounds = array<i64: 1>, scalar_prefetch = 0 : i64, scratch_operands = 0 : i64, tpu.core_type = #tpu.core_type<tc>, window_params = [{transform_indices = @transform_0, window_bounds = array<i64: 2, 32>}, {transform_indices = @transform_1, window_bounds = array<i64: 8, 128>}, {pipeline_mode = #tpu.pipeline_mode<synchronous>, transform_indices = @transform_2, window_bounds = array<i64: 32, 32>}, {pipeline_mode = #tpu.pipeline_mode<synchronous>, transform_indices = @transform_3, window_bounds = array<i64: 64, 32>}, {pipeline_mode = #tpu.pipeline_mode<synchronous>, transform_indices = @transform_4, window_bounds = array<i64: 1, 32>}, {pipeline_mode = #tpu.pipeline_mode<synchronous>, transform_indices = @transform_5, window_bounds = array<i64: 1, 32>}, {transform_indices = @transform_6, window_bounds = array<i64: 2, 8>}]} {
    %c0 = arith.constant 0 : index
    %c0_0 = arith.constant 0 : index
    %0 = vector.load %arg1[%c0, %c0_0] : memref<2x32xf32, #tpu.memory_space<vmem>>, vector<2x32xf32>
    %c0_1 = arith.constant 0 : index
    %c0_2 = arith.constant 0 : index
    %1 = vector.load %arg3[%c0_1, %c0_2] : memref<32x32xf32, #tpu.memory_space<vmem>>, vector<32x32xf32>
    %cst = arith.constant dense<0.000000e+00> : vector<2x32xf32>
    %2 = tpu.matmul %0, %1, %cst {dimension_numbers = #tpu.dot_dimension_numbers<[1], [0], [0], [1], [0, 0, 1, 1], [], []>} : vector<2x32xf32>, vector<32x32xf32>, vector<2x32xf32> -> vector<2x32xf32>
    %c0_3 = arith.constant 0 : index
    %c0_4 = arith.constant 0 : index
    %3 = vector.load %arg5[%c0_3, %c0_4] : memref<1x32xf32, #tpu.memory_space<vmem>>, vector<1x32xf32>
    %4 = vector.broadcast %3 : vector<1x32xf32> to vector<2x32xf32>
    %5 = arith.addf %2, %4 : vector<2x32xf32>
    %c0_5 = arith.constant 0 : index
    %c0_6 = arith.constant 0 : index
    %6 = vector.load %arg4[%c0_5, %c0_6] : memref<64x32xf32, #tpu.memory_space<vmem>>, vector<64x32xf32>
    %c0_7 = arith.constant 0 : index
    %c0_8 = arith.constant 0 : index
    %7 = vector.load %arg6[%c0_7, %c0_8] : memref<1x32xf32, #tpu.memory_space<vmem>>, vector<1x32xf32>
    %c0_9 = arith.constant 0 : index
    %c0_10 = arith.constant 0 : index
    %8 = vector.load %arg2[%c0_9, %c0_10] : memref<8x128xf32, #tpu.memory_space<vmem>>, vector<8x64xf32>
    %cst_11 = arith.constant dense<0.000000e+00> : vector<8x32xf32>
    %9 = tpu.matmul %8, %6, %cst_11 {dimension_numbers = #tpu.dot_dimension_numbers<[1], [0], [0], [1], [0, 0, 1, 1], [], []>} : vector<8x64xf32>, vector<64x32xf32>, vector<8x32xf32> -> vector<8x32xf32>
    %10 = vector.extract_strided_slice %5 {offsets = [0, 0], sizes = [1, 32], strides = [1, 1]} : vector<2x32xf32> to vector<1x32xf32>
    %11 = vector.broadcast %10 : vector<1x32xf32> to vector<8x32xf32>
    %12 = arith.addf %9, %11 : vector<8x32xf32>
    %13 = math.tanh %12 : vector<8x32xf32>
    %cst_12 = arith.constant dense<0.000000e+00> : vector<1x8xf32>
    %14 = tpu.matmul %7, %13, %cst_12 {dimension_numbers = #tpu.dot_dimension_numbers<[1], [1], [0], [0], [0, 0, 1, 0], [], []>} : vector<1x32xf32>, vector<8x32xf32>, vector<1x8xf32> -> vector<1x8xf32>
    %c0_13 = arith.constant 0 : index
    %c64 = arith.constant 64 : index
    %15 = vector.load %arg2[%c0_13, %c64] : memref<8x128xf32, #tpu.memory_space<vmem>>, vector<8x64xf32>
    %cst_14 = arith.constant dense<0.000000e+00> : vector<8x32xf32>
    %16 = tpu.matmul %15, %6, %cst_14 {dimension_numbers = #tpu.dot_dimension_numbers<[1], [0], [0], [1], [0, 0, 1, 1], [], []>} : vector<8x64xf32>, vector<64x32xf32>, vector<8x32xf32> -> vector<8x32xf32>
    %17 = vector.extract_strided_slice %5 {offsets = [1, 0], sizes = [1, 32], strides = [1, 1]} : vector<2x32xf32> to vector<1x32xf32>
    %18 = vector.broadcast %17 : vector<1x32xf32> to vector<8x32xf32>
    %19 = arith.addf %16, %18 : vector<8x32xf32>
    %20 = math.tanh %19 : vector<8x32xf32>
    %cst_15 = arith.constant dense<0.000000e+00> : vector<1x8xf32>
    %21 = tpu.matmul %7, %20, %cst_15 {dimension_numbers = #tpu.dot_dimension_numbers<[1], [1], [0], [0], [0, 0, 1, 0], [], []>} : vector<1x32xf32>, vector<8x32xf32>, vector<1x8xf32> -> vector<1x8xf32>
    %22 = tpu.concatenate %14, %21 in 0 : vector<1x8xf32>, vector<1x8xf32> -> vector<2x8xf32>
    %cst_16 = arith.constant dense<0xFF800000> : vector<2xf32>
    %23 = vector.multi_reduction <maximumf>, %22, %cst_16 [1] : vector<2x8xf32> to vector<2xf32>
    %24 = vector.shape_cast %23 : vector<2xf32> to vector<2x1xf32>
    %25 = vector.broadcast %24 : vector<2x1xf32> to vector<2x8xf32>
    %26 = arith.subf %22, %25 : vector<2x8xf32>
    %27 = math.exp %26 : vector<2x8xf32>
    %cst_17 = arith.constant dense<0.000000e+00> : vector<2xf32>
    %28 = vector.multi_reduction <add>, %27, %cst_17 [1] : vector<2x8xf32> to vector<2xf32>
    %29 = vector.shape_cast %28 : vector<2xf32> to vector<2x1xf32>
    %30 = vector.broadcast %29 : vector<2x1xf32> to vector<2x8xf32>
    %31 = arith.divf %27, %30 : vector<2x8xf32>
    %c0_18 = arith.constant 0 : index
    %c0_19 = arith.constant 0 : index
    %32 = vector.load %arg7[%c0_18, %c0_19] : memref<2x8xf32, #tpu.memory_space<vmem>>, vector<2x8xf32>
    tpu.vector_store %arg7[%c0_18, %c0_19], %31 {strides = array<i32>} : memref<2x8xf32, #tpu.memory_space<vmem>>, vector<2x8xf32>,
    return
  }
  func.func @transform_0(%arg0: i32) -> (i32, i32) {
    %c0_i32 = arith.constant 0 : i32
    %c0_i32_0 = arith.constant 0 : i32
    return %arg0, %c0_i32 : i32, i32
  }
  func.func @transform_1(%arg0: i32) -> (i32, i32) {
    %c0_i32 = arith.constant 0 : i32
    %c0_i32_0 = arith.constant 0 : i32
    return %c0_i32, %arg0 : i32, i32
  }
  func.func @transform_2(%arg0: i32) -> (i32, i32) {
    %c0_i32 = arith.constant 0 : i32
    %c0_i32_0 = arith.constant 0 : i32
    %c0_i32_1 = arith.constant 0 : i32
    return %c0_i32, %c0_i32_0 : i32, i32
  }
  func.func @transform_3(%arg0: i32) -> (i32, i32) {
    %c0_i32 = arith.constant 0 : i32
    %c0_i32_0 = arith.constant 0 : i32
    %c0_i32_1 = arith.constant 0 : i32
    return %c0_i32, %c0_i32_0 : i32, i32
  }
  func.func @transform_4(%arg0: i32) -> (i32, i32) {
    %c0_i32 = arith.constant 0 : i32
    %c0_i32_0 = arith.constant 0 : i32
    %c0_i32_1 = arith.constant 0 : i32
    return %c0_i32, %c0_i32_0 : i32, i32
  }
  func.func @transform_5(%arg0: i32) -> (i32, i32) {
    %c0_i32 = arith.constant 0 : i32
    %c0_i32_0 = arith.constant 0 : i32
    %c0_i32_1 = arith.constant 0 : i32
    return %c0_i32, %c0_i32_0 : i32, i32
  }
  func.func @transform_6(%arg0: i32) -> (i32, i32) {
    %c0_i32 = arith.constant 0 : i32
    %c0_i32_0 = arith.constant 0 : i32
    return %arg0, %c0_i32 : i32, i32
  }
}

</mosaic_0001>

<bundles_post_ra>
// kernel: attention_forward.1
= control target key start
LH: loop header
LB: loop body
LE: loop exit
PB: predicated region body
PF: predicated region fallthrough
CT: control target
= control target key end

     0   :  { %s620_s27 = smov 64   ;;  %v621_v3 = vmov 0.0|0.0   ;;  %vm622_vm0 = vmmov 0   ;;  %v623_v12 = vmov 0.0   ;;  %s733_s0 = inlined_call_operand.vmem [shape: f32[2,32], index: 0, kind: input, shape index: {}]   ;;  %s734_s1 = inlined_call_operand.vmem [shape: f32[8,128], index: 1, kind: input, shape index: {}]   ;;  %s735_s2 = inlined_call_operand.vmem [shape: f32[32,32], index: 2, kind: input, shape index: {}]   ;;  %s736_s3 = inlined_call_operand.vmem [shape: f32[64,32], index: 3, kind: input, shape index: {}]   ;;  %s737_s4 = inlined_call_operand.vmem [shape: f32[1,32], index: 4, kind: input, shape index: {}]   ;;  %s738_s5 = inlined_call_operand.vmem [shape: f32[1,32], index: 5, kind: input, shape index: {}]   ;;  %s739_s6 = inlined_call_operand.hbm [shape: f32[2,8], index: 6, kind: output, shape index: {}]  }
   0x1   :  { %v119_v0 = vld [vmem:[%s734_s1] sm:$0xff]  ;;  %v111_v2 = vld [vmem:[%s736_s3 + $0x8] sm:$0xff]  ;;  %559 = vmatprep.subr.bf16.mxu1 %v621_v3  ;;  %v112_v7 = vld [vmem:[%s736_s3 + $0x10] sm:$0xff]  ;;  %553 = vmatprep.subr.bf16.mxu0 %v621_v3 }
   0x2   :  { %v110_v1 = vld [vmem:[%s736_s3] sm:$0xff]  ;;  %279 = vrot.lane.b32.xlu0 %v119_v0, %s620_s27  ;;  %v26_v6 = vld [vmem:[%s735_s2 + $0x8] sm:$0xff]  ;;  %v113_v9 = vld [vmem:[%s736_s3 + $0x18] sm:$0xff]  ;;  %502 = vmatprep.mubr.msk.f32.mxu0 %vm622_vm0, %v623_v12 }
   0x3   :  { %v560_v4 = vpack.c.bf16 %v111_v2, %v110_v1  ;;  %v25_v5 = vld [vmem:[%s735_s2] sm:$0xff]  ;;  %v27_v10 = vld [vmem:[%s735_s2 + $0x10] sm:$0xff]  ;;  %v28_v11 = vld [vmem:[%s735_s2 + $0x18] sm:$0xff]  ;;  %v563_v13 = vpack.c.bf16 %v113_v9, %v112_v7  ;;  %521 = vmatprep.mubr.msk.f32.mxu1 %vm622_vm0, %v623_v12 }
   0x4   :  { %v554_v8 = vpack.c.bf16 %v26_v6, %v25_v5  ;;  %v557_v14 = vpack.c.bf16 %v28_v11, %v27_v10  ;;  %v114_v15 = vld [vmem:[%s736_s3 + $0x20] sm:$0xff]  ;;  %v115_v16 = vld [vmem:[%s736_s3 + $0x28] sm:$0xff] }
   0x5   :  { %561 = vmatpush3.bf16.msra.mxu1 %v560_v4 }
   0x6   :  { %555 = vmatpush3.bf16.msra.mxu0 %v554_v8  ;;  %562 = vmatprep.subr.bf16.mxu1 %v621_v3 }
   0x7   :  { %556 = vmatprep.subr.bf16.mxu0 %v621_v3 }
   0x8   :  { %11 = vsyncpa [#allocation3], 0  ;;  %v566_v17 = vpack.c.bf16 %v115_v16, %v114_v15  ;;  %v24_v18 = vld [vmem:[%s733_s0] sm:$0x3]  ;;  %vm36_vm1 = vcmask 261120   ;;  %v116_v19 = vld [vmem:[%s736_s3 + $0x30] sm:$0xff]  ;;  %v120_v23 = vlaneseq }
   0x9   :  { %564 = vmatpush3.bf16.msra.mxu1 %v563_v13  ;;  %v117_v20 = vld [vmem:[%s736_s3 + $0x38] sm:$0xff]  ;;  %vm124_vm2 = vcmask 523264   ;;  %v459_v25 = vld [vmem:[%s737_s4] ss:$0 sm:$0xff]  ;;  %vm430_vm3 = vcmask 1040384   ;;  %vm432_vm4 = vcmask 58368  }
   0xa   :  { %558 = vmatpush3.bf16.msra.mxu0 %v557_v14  ;;  %565 = vmatprep.subr.bf16.mxu1 %v621_v3  ;;  %v569_v21 = vpack.c.bf16 %v117_v20, %v116_v19  ;;  %v121_v24 = vshrl.u32 %v120_v23, 7  ;;  %v118_v37 = vld [vmem:[%s738_s5] sm:$0x1]  ;;  %s624_s4 = smov [#allocation2]  }
   0xb   :  { %571 = vmatprep.subr.bf16.mxu0 %v621_v3  ;;  %s451_s5 = sshll.u32 %s624_s4, 4  ;;  %s452_s5 = int_to_ptr.vmem [resolvable:$true] %s451_s5 }
   0xc   :  { %v277_v26 = vsub.s32 1, %v121_v24  ;;  %v122_v28 = vsub.s32 0, %v121_v24  ;;  %s596_s26 = scalar_lea.vmem %s452_s5, 32  ;;  %p601_p1 = scmp.lt.s32.totalorder %s452_s5, %s452_s5 }
   0xd   :  { %567 = vmatpush3.bf16.msra.mxu1 %v566_v17  ;;  %503 = vmatmul.mubr.msk.f32.vlgmr.msra.gmra.mrb[0].mxu0 %vm36_vm1, %v24_v18  ;;  %p597_p0 = scmp.ne.s32.totalorder %s452_s5, %s596_s26  ;;  %p602_p2 = scmp.lt.s32.totalorder %s596_s26, %s596_s26 }
   0xe   :  { %568 = vmatprep.subr.bf16.mxu1 %v621_v3  ;;  %573 = vmatpush3.bf16.msra.mxu0 %v560_v4 }
   0xf   :  { %574 = vmatprep.subr.bf16.mxu0 %v621_v3  ;;  %545 = vmatprep.mubr.msk.f32.mxu0 %vm622_vm0, %v623_v12  ;;  %p603_p3 = por %p602_p2, %p601_p1 }
  0x11   :  { %570 = vmatpush3.bf16.msra.mxu1 %v569_v21  ;;  %p604_p4 = pnand %p603_p3, %p597_p0 }
  0x12   :  { %576 = vmatpush3.bf16.msra.mxu0 %v563_v13  ;;  %524 = vmatprep.subr.mxu1 %v623_v12 }
  0x13   :  { %577 = vmatprep.subr.bf16.mxu0 %v621_v3 }
  0x14   :  { %522 = vmatmul.mubr.msk.f32.vlgmr.msra.gmra.mrb[0].mxu1 %vm124_vm2, %v119_v0 }
  0x15   :  { %526 = vmatprep.mubr.msk.f32.mxu1 %vm622_vm0, %v623_v12 }
  0x16   :  { %579 = vmatpush3.bf16.msra.mxu0 %v566_v17 }
  0x17   :  { %580 = vmatprep.subr.bf16.mxu0 %v621_v3 }
  0x1a   :  { %582 = vmatpush3.bf16.msra.mxu0 %v569_v21 }
  0x74   :  { %v280_v22 = vpop.permute.xlu0 %279 }
  0x75   :  { %546 = vmatmul.mubr.msk.f32.vlgmr.msra.gmra.mrb[2].mxu0 %vm124_vm2, %v280_v22 }
  0xe0   :  { %v106_v27 = vpop.f32.mrb[0].mxu0 }
  0xe1   :  { %v107_v29 = vadd.f32 %v459_v25, %v106_v27  ;;  %v504_v30 = vpop.f32.mrb[1].mxu0 }
  0xe3   :  { %v278_v31 = vrot.slane %v107_v29, %v277_v26  ;;  %v123_v32 = vrot.slane %v107_v29, %v122_v28 }
  0xe7   :  { %v194_v33 = vpop.f32.mrb[0].mxu1 }
  0xe8   :  { %v195_v34 = vadd.f32 %v194_v33, %v123_v32  ;;  %v523_v35 = vpop.f32.mrb[1].mxu1 }
  0xea   :  { %588 = vtanh.f32 %v195_v34 }
  0xf4   :  { %v589_v36 = vpop.eup %588 }
  0xf5   :  { %525 = vmatpush3.xpose.msk.msra.mxu1 %vm36_vm1, %v589_v36 }
  0xf6   :  { %548 = vmatprep.subr.mxu1 %v623_v12 }
  0xf8   :  { %527 = vmatmul.mubr.msk.f32.vlgmr.msra.gmra.mrb[2].mxu1 %vm36_vm1, %v118_v37 }
  0xf9   :  { %550 = vmatprep.mubr.msk.f32.mxu1 %vm622_vm0, %v623_v12 }
 0x148   :  { %v349_v38 = vpop.f32.mrb[2].mxu0 }
 0x149   :  { %v350_v39 = vadd.f32 %v349_v38, %v278_v31  ;;  %v547_v40 = vpop.f32.mrb[3].mxu0 }
 0x14b   :  { %590 = vtanh.f32 %v350_v39 }
 0x155   :  { %v591_v41 = vpop.eup %590 }
 0x156   :  { %549 = vmatpush3.xpose.msk.msra.mxu1 %vm36_vm1, %v591_v41 }
 0x159   :  { %551 = vmatmul.mubr.msk.f32.vlgmr.msra.gmra.mrb[4].mxu1 %vm36_vm1, %v118_v37 }
 0x1cb   :  { %v271_v42 = vpop.f32.mrb[2].mxu1 }
 0x1cc   :  { %v528_v43 = vpop.f32.mrb[3].mxu1 }
 0x22c   :  { %v423_v44 = vpop.f32.mrb[4].mxu1 }
 0x22d   :  { %v428_v45 = vrot.slane %v423_v44, 7  ;;  %v552_v46 = vpop.f32.mrb[5].mxu1 }
 0x22f   :  { %v431_v47 = vsel %vm430_vm3, %v271_v42, %v428_v45 }
 0x230   :  { %v433_v48 = vsel %vm432_vm4, %v431_v47, -inf }
 0x231   :  { %434 = vmax.xlane.f32.xlu0 %v433_v48 }
 0x2be   :  { %v435_v49 = vpop.xlane.xlu0 %434 }
 0x2bf   :  { %v436_v50 = vsub.f32 %v431_v47, %v435_v49 }
 0x2c1   :  { %v437_v51 = vmul.f32 1.442695, %v436_v50 }
 0x2c3   :  { %592 = vpow2.f32 %v437_v51 }
 0x2cd   :  { %v593_v52 = vpop.eup %592 }
 0x2ce   :  { %v439_v53 = vsel %vm432_vm4, %v593_v52, 0.0 }
 0x2cf   :  { %440 = vadd.xlane.f32.xlu1 %v439_v53 }
 0x35c   :  { %v441_v54 = vpop.xlane.xlu1 %440 }
 0x35d   :  { %594 = vrcp.f32 %v441_v54 }
 0x367   :  { %v595_v55 = vpop.eup %594 }
 0x368   :  { %v443_v56 = vmul.f32 %v595_v55, %v593_v52 }
 0x36a   :  { %444 = vst.msk [vmem:[#allocation2] sm:$0x3] %vm432_vm4, %v443_v56 }
 0x36b   :  { %607 = shalt.err (!%p604_p4)
}
 0x36c   :  { %s608_s29 = scalar_lea.hbm %s739_s6, 32 }
 0x36d   :  { %p609_p5 = scmp.ne.s32.totalorder %s739_s6, %s608_s29  ;;  %p612_p6 = scmp.lt.u32.totalorder %s608_s29, %s739_s6 }
 0x36f   :  { %p614_p7 = pnand %p612_p6, %p609_p5 }
 0x371   :  { %617 = shalt.err (!%p614_p7)
}
 0x372   :  { %454 = dma.vmem_to_hbm [thread:$0]  %s452_s5, 32, %s739_s6, [#allocation3]  }
 0x373   :  { %618 = dma.done.wait [#allocation3], 32  }
 0x374   :  { %619 = vsyncadd [#allocation3], 4294967264 }
 0x375   :  { %458 = vsyncpa [#allocation3], 1 }

</bundles_post_ra>
